<compile_context>
chip_gen: v5e
topology: v5e:2x2
jax: 0.10.0
libtpu: 0.0.40
codegen_flags: <defaults>
</compile_context>

<pallas_src>
import jax
import jax.numpy as jnp
from jax import lax
from jax.experimental import pallas as pl
from jax.experimental.pallas import tpu as pltpu

# ---- module hyper-parameters (small but consistent with SIR_Block) ----------
D_MODEL = 32          # d_model (channel dim of h, conv in/out channels)
SEQ_LEN = 16          # L == inchannels (sequence length of h)
J = 6
K_SIZE = 2 * J        # 12
STRIDE = 2
PAD = (K_SIZE - 2) // 2                                   # 5
L_OUT = (SEQ_LEN + 2 * PAD - K_SIZE) // STRIDE + 1        # 8
LN_EPS = 1e-5
BATCH = 2
M_ROWS = BATCH * L_OUT                                    # 16
K_DIM = K_SIZE * D_MODEL                                  # 384 (lane-dense)
N_DIM = 2 * D_MODEL                                       # 64  ([conv1 | conv2])
P_DIM = 4 * D_MODEL                                       # 128 ([b1|adp*b2|gamma|beta])


# ---- Pallas kernel: whole forward, single (gridless) invocation --------------
def sir_block_kernel(cols_ref, w_ref, p_ref, o_ref):
    # One MXU pass: (16, 384) f32 @ (384, 64) f32 -> (16, 64) f32.
    acc = jnp.dot(cols_ref[...], w_ref[...],
                  preferred_element_type=jnp.float32)

    p = p_ref[...]                                  # (1, 128) fused params
    acc = acc + p[:, :N_DIM]                        # fused bias [b1 | adp*b2]
    gamma = p[:, N_DIM:N_DIM + D_MODEL]             # (1, 32) ln2 weight
    beta = p[:, N_DIM + D_MODEL:P_DIM]              # (1, 32) ln2 bias

    acc1 = acc[:, :D_MODEL]                         # conv1 output       (16, 32)
    acc2 = acc[:, D_MODEL:]                         # adp * conv2 output (16, 32)

    # sigmoid gating (adpfactor already folded into acc2)
    x = acc1 * jax.nn.sigmoid(acc2)

    # LayerNorm over d_model, biased variance, eps=1e-5 — one-pass stats.
    mean = jnp.mean(x, axis=-1, keepdims=True)
    mean_sq = jnp.mean(x * x, axis=-1, keepdims=True)
    var = mean_sq - mean * mean
    xn = (x - mean) * lax.rsqrt(var + LN_EPS)
    y = xn * gamma + beta

    # SiLU.  (32-lane masked output store; negligible at 16 rows.)
    o_ref[...] = (y * jax.nn.sigmoid(y)).astype(o_ref.dtype)


# ---- one-time parameter fusion (hoisted out of the per-forward path) ---------
def prepare_sir_params(w1, w2, b1, b2, adp, gamma, beta):
    """Fuse conv weights/biases + LN params once, at init time."""
    adp_f = jnp.asarray(adp, jnp.float32)
    # PyTorch Conv1d weight (out, in, k) -> im2col matrix (k*in, out);
    # fuse the two convs side by side and fold adpfactor into conv2.
    w1m = jnp.transpose(w1, (2, 1, 0)).reshape(K_DIM, D_MODEL)
    w2m = jnp.transpose(w2, (2, 1, 0)).reshape(K_DIM, D_MODEL)
    w_fused = jnp.concatenate([w1m, adp_f * w2m], axis=1).astype(jnp.float32)
    # Exactly 128 lanes: [b1 (32) | adp*b2 (32) | gamma (32) | beta (32)].
    p_fused = jnp.concatenate([b1, adp_f * b2, gamma, beta]
                              ).reshape(1, P_DIM).astype(jnp.float32)
    return w_fused, p_fused


_COST = pl.CostEstimate(
    flops=2 * M_ROWS * K_DIM * N_DIM + 14 * M_ROWS * D_MODEL,        # ~793K
    transcendentals=2 * M_ROWS * D_MODEL + M_ROWS,                   # ~1K
    bytes_accessed=4 * (M_ROWS * K_DIM + K_DIM * N_DIM
                        + P_DIM + M_ROWS * D_MODEL),                 # ~125 KB
)


# ---- per-call forward: im2col (static strided slices) + one pallas_call ------
@jax.jit
def sir_block(h, w_fused, p_fused):
    B, L, D = h.shape
    assert (L, D) == (SEQ_LEN, D_MODEL)

    # im2col for the stride-2, k=12 conv: 12 static strided slices + concat
    # (no gather HLO).  cols[b*L_OUT + r, k*D + d] = x_pad[b, 2r + k, d].
    x_pad = jnp.pad(h, ((0, 0), (PAD, PAD), (0, 0)))          # (B, L+2*PAD, D)
    cols = jnp.concatenate(
        [x_pad[:, k:k + STRIDE * L_OUT:STRIDE, :] for k in range(K_SIZE)],
        axis=-1)                                              # (B, L_OUT, K*D)
    cols = cols.reshape(B * L_OUT, K_SIZE * D).astype(jnp.float32)   # (16, 384)

    out = pl.pallas_call(
        sir_block_kernel,
        out_shape=jax.ShapeDtypeStruct((B * L_OUT, D), jnp.float32),
        in_specs=[
            pl.BlockSpec(memory_space=pltpu.MemorySpace.VMEM),  # im2col acts
            pl.BlockSpec(memory_space=pltpu.MemorySpace.VMEM),  # [W1 | adp*W2]
            pl.BlockSpec(memory_space=pltpu.MemorySpace.VMEM),  # fused params
        ],
        out_specs=pl.BlockSpec(memory_space=pltpu.MemorySpace.VMEM),
        cost_estimate=_COST,
    )(cols, w_fused, p_fused)

    return out.reshape(B, L_OUT, D)


# ---- plain-JAX reference (for a correctness sanity check) --------------------
def sir_block_ref(h, w1, w2, b1, b2, adp, gamma, beta):
    x = jnp.transpose(h, (0, 2, 1))                    # (B, D, L)  NCW
    dn = lax.conv_dimension_numbers(x.shape, w1.shape, ("NCH", "OIH", "NCH"))
    y1 = lax.conv_general_dilated(x, w1, window_strides=(STRIDE,),
                                  padding=[(PAD, PAD)],
                                  dimension_numbers=dn) + b1[None, :, None]
    y2 = lax.conv_general_dilated(x, w2, window_strides=(STRIDE,),
                                  padding=[(PAD, PAD)],
                                  dimension_numbers=dn) + b2[None, :, None]
    y1 = jnp.transpose(y1, (0, 2, 1))                  # (B, L_OUT, D)
    y2 = jnp.transpose(y2, (0, 2, 1))
    gate = jax.nn.sigmoid(adp * y2)
    xo = y1 * gate
    mean = jnp.mean(xo, axis=-1, keepdims=True)
    var = jnp.mean((xo - mean) ** 2, axis=-1, keepdims=True)
    xn = (xo - mean) / jnp.sqrt(var + LN_EPS)
    y = xn * gamma + beta
    return y * jax.nn.sigmoid(y)


if __name__ == "__main__":
    key = jax.random.PRNGKey(0)
    k_h, k_w1, k_w2, k_b1, k_b2 = jax.random.split(key, 5)

    # deterministic synthetic parameters (shapes from SIR_Block.__init__)
    h = jax.random.normal(k_h, (BATCH, SEQ_LEN, D_MODEL), dtype=jnp.float32)
    w1 = jax.random.normal(k_w1, (D_MODEL, D_MODEL, K_SIZE), jnp.float32) * 0.05
    w2 = jax.random.normal(k_w2, (D_MODEL, D_MODEL, K_SIZE), jnp.float32) * 0.05
    b1 = jax.random.normal(k_b1, (D_MODEL,), jnp.float32) * 0.05
    b2 = jax.random.normal(k_b2, (D_MODEL,), jnp.float32) * 0.05
    adp = jnp.float32(1.0)                              # nn.Parameter(tensor(1.0))
    gamma = jnp.ones((D_MODEL,), jnp.float32)           # ln2 weight
    beta = jnp.zeros((D_MODEL,), jnp.float32)           # ln2 bias
    # NOTE: ln1 (LayerNorm(inchannels // 2)) is defined but unused in forward.

    # one-time parameter fusion (outside the per-call hot path)
    w_fused, p_fused = prepare_sir_params(w1, w2, b1, b2, adp, gamma, beta)
    w_fused = jax.block_until_ready(w_fused)
    p_fused = jax.block_until_ready(p_fused)

    out = sir_block(h, w_fused, p_fused)
    out = jax.block_until_ready(out)

    ref = sir_block_ref(h, w1, w2, b1, b2, adp, gamma, beta)
    assert out.shape == (BATCH, L_OUT, D_MODEL)
    # f32 operands; tolerance covers MXU default-precision rounding over K=384.
    assert jnp.allclose(out, ref, atol=2e-2, rtol=2e-2), (
        float(jnp.max(jnp.abs(out - ref))))

    print("KERNEL_OK")
</pallas_src>

<mosaic_0001>
module attributes {stable_mosaic.version = 11 : i64} {
  func.func @sir_block_kernel(%arg0: memref<16x384xf32, #tpu.memory_space<vmem>>, %arg1: memref<384x64xf32, #tpu.memory_space<vmem>>, %arg2: memref<1x128xf32, #tpu.memory_space<vmem>>, %arg3: memref<16x32xf32, #tpu.memory_space<vmem>>) attributes {dimension_semantics = [], scalar_prefetch = 0 : i64, scratch_operands = 0 : i64, tpu.core_type = #tpu.core_type<tc>} {
    %c0 = arith.constant 0 : index
    %c0_0 = arith.constant 0 : index
    %0 = vector.load %arg0[%c0, %c0_0] : memref<16x384xf32, #tpu.memory_space<vmem>>, vector<16x384xf32>
    %c0_1 = arith.constant 0 : index
    %c0_2 = arith.constant 0 : index
    %1 = vector.load %arg1[%c0_1, %c0_2] : memref<384x64xf32, #tpu.memory_space<vmem>>, vector<384x64xf32>
    %cst = arith.constant dense<0.000000e+00> : vector<16x64xf32>
    %2 = tpu.matmul %0, %1, %cst {dimension_numbers = #tpu.dot_dimension_numbers<[1], [0], [0], [1], [0, 0, 1, 1], [], []>} : vector<16x384xf32>, vector<384x64xf32>, vector<16x64xf32> -> vector<16x64xf32>
    %c0_3 = arith.constant 0 : index
    %c0_4 = arith.constant 0 : index
    %3 = vector.load %arg2[%c0_3, %c0_4] : memref<1x128xf32, #tpu.memory_space<vmem>>, vector<1x128xf32>
    %4 = vector.extract_strided_slice %3 {offsets = [0, 0], sizes = [1, 64], strides = [1, 1]} : vector<1x128xf32> to vector<1x64xf32>
    %5 = vector.broadcast %4 : vector<1x64xf32> to vector<16x64xf32>
    %6 = arith.addf %2, %5 : vector<16x64xf32>
    %7 = vector.extract_strided_slice %3 {offsets = [0, 64], sizes = [1, 32], strides = [1, 1]} : vector<1x128xf32> to vector<1x32xf32>
    %8 = vector.extract_strided_slice %3 {offsets = [0, 96], sizes = [1, 32], strides = [1, 1]} : vector<1x128xf32> to vector<1x32xf32>
    %9 = vector.extract_strided_slice %6 {offsets = [0, 0], sizes = [16, 32], strides = [1, 1]} : vector<16x64xf32> to vector<16x32xf32>
    %10 = vector.extract_strided_slice %6 {offsets = [0, 32], sizes = [16, 32], strides = [1, 1]} : vector<16x64xf32> to vector<16x32xf32>
    %11 = arith.negf %10 : vector<16x32xf32>
    %12 = math.exp %11 : vector<16x32xf32>
    %cst_5 = arith.constant 1.000000e+00 : f32
    %13 = vector.broadcast %cst_5 : f32 to vector<16x32xf32>
    %14 = arith.addf %13, %12 : vector<16x32xf32>
    %15 = arith.divf %13, %14 : vector<16x32xf32>
    %16 = arith.mulf %9, %15 : vector<16x32xf32>
    %cst_6 = arith.constant dense<0.000000e+00> : vector<16xf32>
    %17 = vector.multi_reduction <add>, %16, %cst_6 [1] : vector<16x32xf32> to vector<16xf32>
    %18 = vector.shape_cast %17 : vector<16xf32> to vector<16x1xf32>
    %cst_7 = arith.constant 3.200000e+01 : f32
    %19 = vector.broadcast %cst_7 : f32 to vector<16x1xf32>
    %20 = arith.divf %18, %19 : vector<16x1xf32>
    %21 = arith.mulf %16, %16 : vector<16x32xf32>
    %cst_8 = arith.constant dense<0.000000e+00> : vector<16xf32>
    %22 = vector.multi_reduction <add>, %21, %cst_8 [1] : vector<16x32xf32> to vector<16xf32>
    %23 = vector.shape_cast %22 : vector<16xf32> to vector<16x1xf32>
    %cst_9 = arith.constant 3.200000e+01 : f32
    %24 = vector.broadcast %cst_9 : f32 to vector<16x1xf32>
    %25 = arith.divf %23, %24 : vector<16x1xf32>
    %26 = arith.mulf %20, %20 : vector<16x1xf32>
    %27 = arith.subf %25, %26 : vector<16x1xf32>
    %28 = vector.broadcast %20 : vector<16x1xf32> to vector<16x32xf32>
    %29 = arith.subf %16, %28 : vector<16x32xf32>
    %cst_10 = arith.constant 9.99999974E-6 : f32
    %30 = vector.broadcast %cst_10 : f32 to vector<16x1xf32>
    %31 = arith.addf %27, %30 : vector<16x1xf32>
    %32 = math.rsqrt %31 : vector<16x1xf32>
    %33 = vector.broadcast %32 : vector<16x1xf32> to vector<16x32xf32>
    %34 = arith.mulf %29, %33 : vector<16x32xf32>
    %35 = vector.broadcast %7 : vector<1x32xf32> to vector<16x32xf32>
    %36 = arith.mulf %34, %35 : vector<16x32xf32>
    %37 = vector.broadcast %8 : vector<1x32xf32> to vector<16x32xf32>
    %38 = arith.addf %36, %37 : vector<16x32xf32>
    %39 = arith.negf %38 : vector<16x32xf32>
    %40 = math.exp %39 : vector<16x32xf32>
    %cst_11 = arith.constant 1.000000e+00 : f32
    %41 = vector.broadcast %cst_11 : f32 to vector<16x32xf32>
    %42 = arith.addf %41, %40 : vector<16x32xf32>
    %43 = arith.divf %41, %42 : vector<16x32xf32>
    %44 = arith.mulf %38, %43 : vector<16x32xf32>
    %c0_12 = arith.constant 0 : index
    %c0_13 = arith.constant 0 : index
    %45 = vector.load %arg3[%c0_12, %c0_13] : memref<16x32xf32, #tpu.memory_space<vmem>>, vector<16x32xf32>
    tpu.vector_store %arg3[%c0_12, %c0_13], %44 {strides = array<i32>} : memref<16x32xf32, #tpu.memory_space<vmem>>, vector<16x32xf32>,
    return
  }
}

</mosaic_0001>

<bundles_post_ra>
// kernel: sir_block.1
= control target key start
LH: loop header
LB: loop body
LE: loop exit
PB: predicated region body
PF: predicated region fallthrough
CT: control target
= control target key end

     0   :  { %s599_s0 = inlined_call_operand.vmem [shape: f32[16,384], index: 0, kind: input, shape index: {}]   ;;  %s600_s1 = inlined_call_operand.vmem [shape: f32[384,64], index: 1, kind: input, shape index: {}]   ;;  %s601_s2 = inlined_call_operand.vmem [shape: f32[1,128], index: 2, kind: input, shape index: {}]   ;;  %s602_s3 = inlined_call_operand.hbm [shape: f32[16,32], index: 3, kind: output, shape index: {}]  }
   0x1   :  { %v68_v0 = vld [vmem:[%s600_s1 + $0x178] sm:$0xff]  ;;  %v67_v2 = vld [vmem:[%s600_s1 + $0x170] sm:$0xff]  ;;  %v66_v5 = vld [vmem:[%s600_s1 + $0x168] sm:$0xff] }
   0x2   :  { %v36_v1 = vld [vmem:[%s600_s1 + $0x78] sm:$0xff]  ;;  %119 = vmatpush.msra.mxu2 %v68_v0  ;;  %v35_v3 = vld [vmem:[%s600_s1 + $0x70] sm:$0xff]  ;;  %v34_v6 = vld [vmem:[%s600_s1 + $0x68] sm:$0xff] }
   0x3   :  { %73 = vmatpush.msra.mxu0 %v36_v1  ;;  %v52_v4 = vld [vmem:[%s600_s1 + $0xf8] sm:$0xff]  ;;  %320 = vmatpush.msra.mxu3 %v36_v1  ;;  %v51_v7 = vld [vmem:[%s600_s1 + $0xf0] sm:$0xff]  ;;  %v50_v8 = vld [vmem:[%s600_s1 + $0xe8] sm:$0xff] }
   0x4   :  { %96 = vmatpush.msra.mxu1 %v52_v4  ;;  %120 = vmatpush.msra.mxu2 %v67_v2  ;;  %v65_v9 = vld [vmem:[%s600_s1 + $0x160] sm:$0xff]  ;;  %v64_v12 = vld [vmem:[%s600_s1 + $0x158] sm:$0xff]  ;;  %v63_v15 = vld [vmem:[%s600_s1 + $0x150] sm:$0xff] }
   0x5   :  { %74 = vmatpush.msra.mxu0 %v35_v3  ;;  %321 = vmatpush.msra.mxu3 %v35_v3  ;;  %v33_v10 = vld [vmem:[%s600_s1 + $0x60] sm:$0xff]  ;;  %v32_v13 = vld [vmem:[%s600_s1 + $0x58] sm:$0xff]  ;;  %v31_v16 = vld [vmem:[%s600_s1 + $0x50] sm:$0xff] }
   0x6   :  { %97 = vmatpush.msra.mxu1 %v51_v7  ;;  %121 = vmatpush.msra.mxu2 %v66_v5  ;;  %v49_v11 = vld [vmem:[%s600_s1 + $0xe0] sm:$0xff]  ;;  %v48_v14 = vld [vmem:[%s600_s1 + $0xd8] sm:$0xff]  ;;  %v47_v17 = vld [vmem:[%s600_s1 + $0xd0] sm:$0xff] }
   0x7   :  { %75 = vmatpush.msra.mxu0 %v34_v6  ;;  %322 = vmatpush.msra.mxu3 %v34_v6  ;;  %v62_v18 = vld [vmem:[%s600_s1 + $0x148] sm:$0xff]  ;;  %v61_v21 = vld [vmem:[%s600_s1 + $0x140] sm:$0xff]  ;;  %v60_v24 = vld [vmem:[%s600_s1 + $0x138] sm:$0xff] }
   0x8   :  { %98 = vmatpush.msra.mxu1 %v50_v8  ;;  %122 = vmatpush.msra.mxu2 %v65_v9  ;;  %v30_v19 = vld [vmem:[%s600_s1 + $0x48] sm:$0xff]  ;;  %v29_v22 = vld [vmem:[%s600_s1 + $0x40] sm:$0xff]  ;;  %v28_v25 = vld [vmem:[%s600_s1 + $0x38] sm:$0xff] }
   0x9   :  { %76 = vmatpush.msra.mxu0 %v33_v10  ;;  %323 = vmatpush.msra.mxu3 %v33_v10  ;;  %v46_v20 = vld [vmem:[%s600_s1 + $0xc8] sm:$0xff]  ;;  %v45_v23 = vld [vmem:[%s600_s1 + $0xc0] sm:$0xff]  ;;  %v44_v26 = vld [vmem:[%s600_s1 + $0xb8] sm:$0xff] }
   0xa   :  { %99 = vmatpush.msra.mxu1 %v49_v11  ;;  %123 = vmatpush.msra.mxu2 %v64_v12  ;;  %v59_v27 = vld [vmem:[%s600_s1 + $0x130] sm:$0xff]  ;;  %v58_v29 = vld [vmem:[%s600_s1 + $0x128] sm:$0xff] }
   0xb   :  { %77 = vmatpush.msra.mxu0 %v32_v13  ;;  %324 = vmatpush.msra.mxu3 %v32_v13  ;;  %v27_v28 = vld [vmem:[%s600_s1 + $0x30] sm:$0xff]  ;;  %v26_v31 = vld [vmem:[%s600_s1 + $0x28] sm:$0xff] }
   0xc   :  { %100 = vmatpush.msra.mxu1 %v48_v14  ;;  %124 = vmatpush.msra.mxu2 %v63_v15  ;;  %v43_v30 = vld [vmem:[%s600_s1 + $0xb0] sm:$0xff] }
   0xd   :  { %78 = vmatpush.msra.mxu0 %v31_v16  ;;  %325 = vmatpush.msra.mxu3 %v31_v16 }
   0xe   :  { %101 = vmatpush.msra.mxu1 %v47_v17  ;;  %125 = vmatpush.msra.mxu2 %v62_v18 }
   0xf   :  { %79 = vmatpush.msra.mxu0 %v30_v19  ;;  %326 = vmatpush.msra.mxu3 %v30_v19 }
  0x10   :  { %102 = vmatpush.msra.mxu1 %v46_v20  ;;  %126 = vmatpush.msra.mxu2 %v61_v21 }
  0x11   :  { %80 = vmatpush.msra.mxu0 %v29_v22  ;;  %327 = vmatpush.msra.mxu3 %v29_v22 }
  0x12   :  { %103 = vmatpush.msra.mxu1 %v45_v23  ;;  %127 = vmatpush.msra.mxu2 %v60_v24 }
  0x13   :  { %81 = vmatpush.msra.mxu0 %v28_v25  ;;  %328 = vmatpush.msra.mxu3 %v28_v25 }
  0x14   :  { %104 = vmatpush.msra.mxu1 %v44_v26 }
  0x15   :  { %8 = vsyncpa [#allocation3], 0  ;;  %128 = vmatpush.msra.mxu2 %v59_v27  ;;  %82 = vmatpush.msra.mxu0 %v27_v28  ;;  %v42_v32 = vld [vmem:[%s600_s1 + $0xa8] sm:$0xff]  ;;  %v57_v33 = vld [vmem:[%s600_s1 + $0x120] sm:$0xff]  ;;  %vm190_vm8 = vcmask 261120   ;;  %s394_s13 = smov 32  }
  0x16   :  { %329 = vmatpush.msra.mxu3 %v27_v28  ;;  %105 = vmatpush.msra.mxu1 %v43_v30  ;;  %v25_v34 = vld [vmem:[%s600_s1 + $0x20] sm:$0xff]  ;;  %v56_v36 = vld [vmem:[%s600_s1 + $0x118] sm:$0xff]  ;;  %v55_v39 = vld [vmem:[%s600_s1 + $0x110] sm:$0xff]  ;;  %s396_s14 = smov [#allocation2]   ;;  %s304_s18 = sshll.u32 %s602_s3, 4  ;;  %s305_s18 = int_to_ptr.hbm [resolvable:$true] %s304_s18 }
  0x17   :  { %129 = vmatpush.msra.mxu2 %v58_v29  ;;  %83 = vmatpush.msra.mxu0 %v26_v31  ;;  %v41_v35 = vld [vmem:[%s600_s1 + $0xa0] sm:$0xff]  ;;  %v24_v37 = vld [vmem:[%s600_s1 + $0x18] sm:$0xff]  ;;  %v23_v40 = vld [vmem:[%s600_s1 + $0x10] sm:$0xff]  ;;  %s302_s15 = sshll.u32 %s396_s14, 4  ;;  %s397_s19 = smov 128   ;;  %s303_s15 = int_to_ptr.vmem [resolvable:$true] %s302_s15 }
  0x18   :  { %330 = vmatpush.msra.mxu3 %v26_v31  ;;  %106 = vmatpush.msra.mxu1 %v42_v32  ;;  %v40_v38 = vld [vmem:[%s600_s1 + $0x98] sm:$0xff]  ;;  %v39_v41 = vld [vmem:[%s600_s1 + $0x90] sm:$0xff]  ;;  %v54_v42 = vld [vmem:[%s600_s1 + $0x108] sm:$0xff]  ;;  %s398_s20 = smov 8  }
  0x19   :  { %130 = vmatpush.msra.mxu2 %v57_v33  ;;  %84 = vmatpush.msra.mxu0 %v25_v34  ;;  %v22_v43 = vld [vmem:[%s600_s1 + $0x8] sm:$0xff]  ;;  %v53_v45 = vld [vmem:[%s600_s1 + $0x100] sm:$0xff]  ;;  %v17_v47 = vld [vmem:[%s599_s0 + $0x10] sm:$0xff] }
  0x1a   :  { %331 = vmatpush.msra.mxu3 %v25_v34  ;;  %107 = vmatpush.msra.mxu1 %v41_v35  ;;  %v38_v44 = vld [vmem:[%s600_s1 + $0x88] sm:$0xff]  ;;  %v21_v46 = vld [vmem:[%s600_s1] sm:$0xff]  ;;  %v18_v50 = vld [vmem:[%s599_s0 + $0x18] sm:$0xff] }
  0x1b   :  { %131 = vmatpush.msra.mxu2 %v56_v36  ;;  %85 = vmatpush.msra.mxu0 %v24_v37  ;;  %v15_v48 = vld [vmem:[%s599_s0] sm:$0xff]  ;;  %v16_v51 = vld [vmem:[%s599_s0 + $0x8] sm:$0xff] }
  0x1c   :  { %332 = vmatpush.msra.mxu3 %v24_v37  ;;  %108 = vmatpush.msra.mxu1 %v40_v38  ;;  %v37_v49 = vld [vmem:[%s600_s1 + $0x80] sm:$0xff]  ;;  %v20_v52 = vld [vmem:[%s599_s0 + $0x28] sm:$0xff] }
  0x1d   :  { %132 = vmatpush.msra.mxu2 %v55_v39  ;;  %86 = vmatpush.msra.mxu0 %v23_v40  ;;  %v19_v53 = vld [vmem:[%s599_s0 + $0x20] sm:$0xff]  ;;  %s392_s0 = smov 96   ;;  %v395_v39 = vmov 32.0  }
  0x1e   :  { %333 = vmatpush.msra.mxu3 %v23_v40  ;;  %109 = vmatpush.msra.mxu1 %v39_v41  ;;  %v584_v54 = vld [vmem:[%s601_s2] ss:$0 sm:$0xff]  ;;  %s393_s2 = smov 64  }
  0x1f   :  { %133 = vmatpush.msra.mxu2 %v54_v42  ;;  %87 = vmatpush.msra.mxu0 %v22_v43 }
  0x20   :  { %334 = vmatpush.msra.mxu3 %v22_v43  ;;  %110 = vmatpush.msra.mxu1 %v38_v44 }
  0x21   :  { %134 = vmatpush.msra.mxu2 %v53_v45  ;;  %88 = vmatpush.msra.mxu0 %v21_v46 }
  0x22   :  { %135 = vmatmul.f32.vlgmr.msra.gmra.mxu2 %v17_v47  ;;  %89 = vmatmul.f32.vlgmr.msra.gmra.mxu0 %v15_v48 }
  0x23   :  { %335 = vmatpush.msra.mxu3 %v21_v46  ;;  %111 = vmatpush.msra.mxu1 %v37_v49 }
  0x24   :  { %92 = vmatmul.f32.vlgmr.msra.gmra.mxu3 %v18_v50  ;;  %112 = vmatmul.f32.vlgmr.msra.gmra.mxu1 %v16_v51 }
  0x2a   :  { %138 = vmatmul.f32.gmra.mxu2 %v20_v52 }
  0x2c   :  { %115 = vmatmul.f32.gmra.mxu1 %v19_v53 }
  0x9f   :  { %v90_v55 = vpop.f32.mrf.mxu0 }
  0xa0   :  { %v91_v56 = vadd.f32 %v584_v54, %v90_v55 }
  0xa1   :  { %v113_v57 = vpop.f32.mrf.mxu1 }
  0xa2   :  { %v114_v58 = vadd.f32 %v113_v57, %v91_v56 }
  0xa5   :  { %v136_v59 = vpop.f32.mrf.mxu2 }
  0xa6   :  { %v137_v60 = vadd.f32 %v136_v59, %v114_v58 }
  0xa7   :  { %v93_v61 = vpop.f32.mrf.mxu3 }
  0xa8   :  { %v316_v62 = vmul.f32 -1.442695, %v137_v60  ;;  %v94_v63 = vadd.f32 %v584_v54, %v93_v61 }
  0xa9   :  { %v116_v0 = vpop.f32.mrf.mxu1 }
  0xaa   :  { %344 = vpow2.f32 %v316_v62  ;;  %v117_v1 = vadd.f32 %v116_v0, %v94_v63 }
  0xad   :  { %v139_v2 = vpop.f32.mrf.mxu2 }
  0xae   :  { %v140_v3 = vadd.f32 %v139_v2, %v117_v1 }
  0xb0   :  { %v345_v4 = vpop.eup %344  ;;  %v317_v5 = vmul.f32 -1.442695, %v140_v3 }
  0xb1   :  { %v148_v6 = vadd.f32 1.0, %v345_v4 }
  0xb2   :  { %346 = vpow2.f32 %v317_v5 }
  0xb3   :  { %348 = vrcp.f32 %v148_v6  ;;  %v161_v12 = vand.u32 2147483648, %v148_v6  ;;  %v159_v14 = vand.u32 2147483647, %v148_v6  ;;  %vm155_vm1 = vweird.f32 %v148_v6 }
  0xb5   :  { %v162_v17 = vor.u32 1.1754944e-38, %v161_v12  ;;  %vm160_vm3 = vcmp.eq.f32.partialorder %v159_v14, 8.507059e+37 }
  0xb8   :  { %v347_v7 = vpop.eup %346 }
  0xb9   :  { %v349_v8 = vpop.eup %348  ;;  %v149_v9 = vadd.f32 1.0, %v347_v7 }
  0xba   :  { %v151_v10 = vmul.f32 %v349_v8, %v148_v6  ;;  %vm156_vm0 = vweird.f32 %v349_v8 }
  0xbb   :  { %350 = vrcp.f32 %v149_v9  ;;  %vm157_vm2 = vmor %vm155_vm1, %vm156_vm0  ;;  %v176_v22 = vand.u32 2147483648, %v149_v9  ;;  %v174_v24 = vand.u32 2147483647, %v149_v9  ;;  %vm170_vm5 = vweird.f32 %v149_v9 }
  0xbc   :  { %v152_v11 = vsub.f32 1.0, %v151_v10  ;;  %352 = vrcp.f32 %v395_v39 }
  0xbd   :  { %v177_v26 = vor.u32 1.1754944e-38, %v176_v22  ;;  %vm175_vm7 = vcmp.eq.f32.partialorder %v174_v24, 8.507059e+37 }
  0xbe   :  { %v153_v13 = vmul.f32 %v349_v8, %v152_v11 }
  0xc0   :  { %v154_v15 = vadd.f32 %v349_v8, %v153_v13 }
  0xc1   :  { %v351_v16 = vpop.eup %350 }
  0xc2   :  { %v158_v18 = vsel %vm157_vm2, %v349_v8, %v154_v15  ;;  %v166_v19 = vmul.f32 %v351_v16, %v149_v9  ;;  %vm171_vm4 = vweird.f32 %v351_v16  ;;  %v353_v40 = vpop.eup %352 }
  0xc3   :  { %v163_v20 = vsel %vm160_vm3, %v162_v17, %v158_v18  ;;  %vm172_vm6 = vmor %vm170_vm5, %vm171_vm4  ;;  %v198_v41 = vmul.f32 32.0, %v353_v40  ;;  %vm202_vm9 = vweird.f32 %v353_v40 }
  0xc4   :  { %182 = vrot.lane.b32.xlu0 %v163_v20, %s392_s0  ;;  %v167_v21 = vsub.f32 1.0, %v166_v19 }
  0xc5   :  { %v199_v42 = vsub.f32 1.0, %v198_v41 }
  0xc6   :  { %v168_v23 = vmul.f32 %v351_v16, %v167_v21 }
  0xc7   :  { %v200_v43 = vmul.f32 %v353_v40, %v199_v42 }
  0xc8   :  { %v169_v25 = vadd.f32 %v351_v16, %v168_v23 }
  0xc9   :  { %v201_v44 = vadd.f32 %v353_v40, %v200_v43 }
  0xca   :  { %v173_v27 = vsel %vm172_vm6, %v351_v16, %v169_v25 }
  0xcb   :  { %v178_v28 = vsel %vm175_vm7, %v177_v26, %v173_v27  ;;  %v203_v45 = vsel %vm202_vm9, %v353_v40, %v201_v44 }
  0xcc   :  { %184 = vrot.lane.b32.xlu0 %v178_v28, %s392_s0 }
  0xd4   :  { %246 = vrot.lane.b32.xlu0 %v584_v54, %s393_s2 }
 0x136   :  { %v183_v29 = vpop.permute.xlu0 %182 }
 0x137   :  { %v188_v30 = vmul.f32 %v183_v29, %v137_v60 }
 0x139   :  { %v191_v31 = vsel %vm190_vm8, %v188_v30, 0.0  ;;  %v206_v32 = vmul.f32 %v188_v30, %v188_v30 }
 0x13a   :  { %192 = vadd.xlane.f32.xlu1 %v191_v31 }
 0x13b   :  { %v208_v33 = vsel %vm190_vm8, %v206_v32, 0.0 }
 0x13c   :  { %209 = vadd.xlane.f32.xlu2 %v208_v33 }
 0x13e   :  { %v185_v34 = vpop.permute.xlu0 %184 }
 0x13f   :  { %v189_v35 = vmul.f32 %v185_v34, %v140_v3 }
 0x141   :  { %v194_v36 = vsel %vm190_vm8, %v189_v35, 0.0  ;;  %v207_v37 = vmul.f32 %v189_v35, %v189_v35 }
 0x142   :  { %195 = vadd.xlane.f32.xlu1 %v194_v36 }
 0x143   :  { %v211_v38 = vsel %vm190_vm8, %v207_v37, 0.0 }
 0x144   :  { %212 = vadd.xlane.f32.xlu2 %v211_v38 }
 0x146   :  { %v247_v9 = vpop.permute.xlu0 %246 }
 0x15b   :  { %251 = vrot.lane.b32.xlu1 %v584_v54, %s394_s13 }
 0x1ad   :  { %v193_v46 = vpop.xlane.xlu1 %192 }
 0x1ae   :  { %v204_v47 = vmul.f32 %v203_v45, %v193_v46 }
 0x1af   :  { %v210_v48 = vpop.xlane.xlu2 %209 }
 0x1b0   :  { %v216_v49 = vmul.f32 %v204_v47, %v204_v47  ;;  %v214_v50 = vmul.f32 %v210_v48, %v203_v45  ;;  %v220_v4 = vsub.f32 %v188_v30, %v204_v47 }
 0x1b2   :  { %v218_v51 = vsub.f32 %v214_v50, %v216_v49 }
 0x1b4   :  { %v222_v52 = vadd.f32 1e-05, %v218_v51 }
 0x1b5   :  { %v196_v53 = vpop.xlane.xlu1 %195 }
 0x1b6   :  { %354 = vrsqrt.f32 %v222_v52  ;;  %v205_v55 = vmul.f32 %v203_v45, %v196_v53  ;;  %vm230_vm11 = vweird.f32 %v222_v52 }
 0x1b7   :  { %v213_v54 = vpop.xlane.xlu2 %212 }
 0x1b8   :  { %v217_v56 = vmul.f32 %v205_v55, %v205_v55  ;;  %v215_v57 = vmul.f32 %v213_v54, %v203_v45  ;;  %v221_v14 = vsub.f32 %v189_v35, %v205_v55 }
 0x1ba   :  { %v219_v58 = vsub.f32 %v215_v57, %v217_v56 }
 0x1bc   :  { %v355_v59 = vpop.eup %354  ;;  %v223_v60 = vadd.f32 1e-05, %v219_v58 }
 0x1bd   :  { %v225_v61 = vmul.f32 %v355_v59, %v222_v52  ;;  %vm231_vm10 = vweird.f32 %v355_v59 }
 0x1be   :  { %356 = vrsqrt.f32 %v223_v60  ;;  %vm232_vm12 = vmor %vm230_vm11, %vm231_vm10  ;;  %vm240_vm14 = vweird.f32 %v223_v60 }
 0x1bf   :  { %v226_v62 = vmul.f32 %v355_v59, %v225_v61 }
 0x1c1   :  { %v227_v63 = vmul.f32 0.5, %v226_v62 }
 0x1c3   :  { %v228_v0 = vsub.f32 1.5, %v227_v63 }
 0x1c4   :  { %v357_v1 = vpop.eup %356 }
 0x1c5   :  { %v235_v2 = vmul.f32 %v357_v1, %v223_v60  ;;  %v229_v3 = vmul.f32 %v355_v59, %v228_v0  ;;  %vm241_vm13 = vweird.f32 %v357_v1 }
 0x1c6   :  { %vm242_vm15 = vmor %vm240_vm14, %vm241_vm13 }
 0x1c7   :  { %v236_v5 = vmul.f32 %v357_v1, %v235_v2  ;;  %v233_v6 = vsel %vm232_vm12, %v355_v59, %v229_v3 }
 0x1c8   :  { %v244_v7 = vmul.f32 %v233_v6, %v220_v4 }
 0x1c9   :  { %v237_v8 = vmul.f32 0.5, %v236_v5 }
 0x1ca   :  { %v249_v11 = vmul.f32 %v247_v9, %v244_v7 }
 0x1cb   :  { %v238_v10 = vsub.f32 1.5, %v237_v8 }
 0x1cd   :  { %v239_v12 = vmul.f32 %v357_v1, %v238_v10  ;;  %v252_v13 = vpop.permute.xlu1 %251 }
 0x1ce   :  { %v254_v15 = vadd.f32 %v252_v13, %v249_v11 }
 0x1cf   :  { %v243_v16 = vsel %vm242_vm15, %v357_v1, %v239_v12 }
 0x1d0   :  { %v245_v17 = vmul.f32 %v243_v16, %v221_v14  ;;  %v318_v18 = vmul.f32 -1.442695, %v254_v15 }
 0x1d2   :  { %v250_v19 = vmul.f32 %v247_v9, %v245_v17  ;;  %358 = vpow2.f32 %v318_v18 }
 0x1d4   :  { %v255_v20 = vadd.f32 %v252_v13, %v250_v19 }
 0x1d6   :  { %v319_v21 = vmul.f32 -1.442695, %v255_v20 }
 0x1d8   :  { %v359_v22 = vpop.eup %358  ;;  %360 = vpow2.f32 %v319_v21 }
 0x1d9   :  { %v262_v23 = vadd.f32 1.0, %v359_v22 }
 0x1db   :  { %362 = vrcp.f32 %v262_v23  ;;  %v275_v29 = vand.u32 2147483648, %v262_v23  ;;  %v273_v31 = vand.u32 2147483647, %v262_v23  ;;  %vm269_vm1 = vweird.f32 %v262_v23 }
 0x1dd   :  { %v276_v35 = vor.u32 1.1754944e-38, %v275_v29  ;;  %vm274_vm3 = vcmp.eq.f32.partialorder %v273_v31, 8.507059e+37 }
 0x1de   :  { %v361_v24 = vpop.eup %360 }
 0x1df   :  { %v263_v25 = vadd.f32 1.0, %v361_v24 }
 0x1e1   :  { %v363_v26 = vpop.eup %362  ;;  %364 = vrcp.f32 %v263_v25  ;;  %v290_v39 = vand.u32 2147483648, %v263_v25  ;;  %v288_v41 = vand.u32 2147483647, %v263_v25  ;;  %vm284_vm5 = vweird.f32 %v263_v25 }
 0x1e2   :  { %v265_v27 = vmul.f32 %v363_v26, %v262_v23  ;;  %vm270_vm0 = vweird.f32 %v363_v26 }
 0x1e3   :  { %vm271_vm2 = vmor %vm269_vm1, %vm270_vm0  ;;  %v291_v44 = vor.u32 1.1754944e-38, %v290_v39  ;;  %vm289_vm7 = vcmp.eq.f32.partialorder %v288_v41, 8.507059e+37 }
 0x1e4   :  { %v266_v28 = vsub.f32 1.0, %v265_v27 }
 0x1e6   :  { %v267_v30 = vmul.f32 %v363_v26, %v266_v28 }
 0x1e7   :  { %v365_v32 = vpop.eup %364 }
 0x1e8   :  { %v268_v33 = vadd.f32 %v363_v26, %v267_v30  ;;  %v280_v34 = vmul.f32 %v365_v32, %v263_v25  ;;  %vm285_vm4 = vweird.f32 %v365_v32 }
 0x1e9   :  { %vm286_vm6 = vmor %vm284_vm5, %vm285_vm4 }
 0x1ea   :  { %v272_v36 = vsel %vm271_vm2, %v363_v26, %v268_v33  ;;  %v281_v37 = vsub.f32 1.0, %v280_v34 }
 0x1eb   :  { %v277_v38 = vsel %vm274_vm3, %v276_v35, %v272_v36 }
 0x1ec   :  { %v282_v40 = vmul.f32 %v365_v32, %v281_v37  ;;  %v294_v42 = vmul.f32 %v277_v38, %v254_v15 }
 0x1ee   :  { %v283_v43 = vadd.f32 %v365_v32, %v282_v40  ;;  %296 = vst.msk [vmem:[#allocation2] sm:$0xff] %vm190_vm8, %v294_v42 }
 0x1f0   :  { %v287_v45 = vsel %vm286_vm6, %v365_v32, %v283_v43 }
 0x1f1   :  { %v292_v46 = vsel %vm289_vm7, %v291_v44, %v287_v45 }
 0x1f2   :  { %v295_v47 = vmul.f32 %v292_v46, %v255_v20 }
 0x1f4   :  { %297 = vst.msk [vmem:[#allocation2 + $0x8] sm:$0xff] %vm190_vm8, %v295_v47 }
 0x1f5   :  { %310 = dma.vmem_to_hbm [thread:$0]  %s303_s15, 256, %s305_s18, [#allocation3], %s397_s19, %s397_s19, %s398_s20  }
 0x1f6   :  { %390 = dma.done.wait [#allocation3], 256  }
 0x1f7   :  { %391 = vsyncadd [#allocation3], 4294967040 }
 0x1f8   :  { %315 = vsyncpa [#allocation3], 1 }

</bundles_post_ra>
